<compile_context>
chip_gen: v6e
topology: v6e:2x2x1
jax: 0.10.0
libtpu: 0.0.40
codegen_flags: <defaults>
</compile_context>

<pallas_src>
import functools
import math

import jax
import jax.numpy as jnp
from jax.experimental import pallas as pl
from jax.experimental.pallas import tpu as pltpu

# Model dims (fixed by the PyTorch module).
IN_DIM, H1, H2, OUT_DIM = 12, 32, 16, 5
IN_PAD = 16    # input rows padded to a full sublane pair (2 x 8)
OUT_PAD = 8    # output rows padded to one full sublane tile


def _round_up(n: int, m: int) -> int:
    return ((n + m - 1) // m) * m


# ---- packed parameter slab layout (row ranges are 8-sublane aligned) -------
_W1_R0 = 0                 # W1 rows [0, 32), cols [0, 16) (cols 12..15 zero)
_W2_R0 = 32                # W2 rows [32, 48), cols [0, 32)
_W3_R0 = 48                # W3 rows [48, 56), cols [0, 16) (rows 5..7 zero)
PARAM_ROWS = 56
PARAM_COLS = 128           # one lane tile
_B1_COL = IN_PAD           # bias columns inside each weight's row range
_B2_COL = H1
_B3_COL = H2


def _gelu_exact(x):
    # PyTorch nn.GELU() default: 0.5 * x * (1 + erf(x / sqrt(2)))
    inv_sqrt2 = jnp.float32(1.0 / math.sqrt(2.0))
    return 0.5 * x * (1.0 + jax.lax.erf(x * inv_sqrt2))


def _gelu_tanh(x):
    # tanh approximation (transcendental goes to the EUP slot); ~1e-3 off the
    # exact-erf nn.GELU() numerics.
    c = jnp.float32(math.sqrt(2.0 / math.pi))
    return 0.5 * x * (1.0 + jnp.tanh(c * (x + jnp.float32(0.044715) * x * x * x)))


def mlp_kernel(p_ref, x_ref, o_ref, *, approximate_gelu):
    gelu = _gelu_tanh if approximate_gelu else _gelu_exact

    # Static slices of the single packed parameter slab (resident in VMEM).
    w1 = p_ref[_W1_R0:_W1_R0 + H1, 0:IN_PAD]                   # (32, 16)
    b1 = p_ref[_W1_R0:_W1_R0 + H1, _B1_COL:_B1_COL + 1]        # (32, 1)
    w2 = p_ref[_W2_R0:_W2_R0 + H2, 0:H1]                       # (16, 32)
    b2 = p_ref[_W2_R0:_W2_R0 + H2, _B2_COL:_B2_COL + 1]        # (16, 1)
    w3 = p_ref[_W3_R0:_W3_R0 + OUT_PAD, 0:H2]                  # (8, 16)
    b3 = p_ref[_W3_R0:_W3_R0 + OUT_PAD, _B3_COL:_B3_COL + 1]   # (8, 1)

    xt = x_ref[...]                                            # (16, TILE) lane-dense

    h1 = gelu(jnp.dot(w1, xt, preferred_element_type=jnp.float32) + b1)  # (32, T)
    h2 = gelu(jnp.dot(w2, h1, preferred_element_type=jnp.float32) + b2)  # (16, T)
    h3 = jnp.dot(w3, h2, preferred_element_type=jnp.float32) + b3        # (8, T)

    o_ref[...] = h3.astype(o_ref.dtype)                        # full-vreg stores


@functools.partial(jax.jit, static_argnames=("tile_b", "approximate_gelu"))
def lipschitz_nn_forward(x, packed_params, *, tile_b=8192, approximate_gelu=False):
    """x: (batch, 12) f32, packed_params: (56, 128) f32 -> (batch, 5) f32."""
    batch = x.shape[0]

    # Lane-dense tiling: tile is always a multiple of 128.
    tile_b = max(128, _round_up(tile_b, 128))
    b128 = _round_up(batch, 128)
    # Ensure >=2 grid steps whenever the batch spans >1 lane tile so both v7x
    # TensorCores get work; single-step otherwise.
    half = _round_up((b128 + 1) // 2, 128)
    tile = min(tile_b, half) if b128 > 128 else 128
    b_pad = _round_up(batch, tile)

    # Single fused transpose+pad pass: (batch, 12) -> (16, b_pad).
    x_t = jnp.pad(x.astype(jnp.float32).T,
                  ((0, IN_PAD - IN_DIM), (0, b_pad - batch)))

    grid = (b_pad // tile,)
    kernel = functools.partial(mlp_kernel, approximate_gelu=approximate_gelu)
    out_t = pl.pallas_call(
        kernel,
        out_shape=jax.ShapeDtypeStruct((OUT_PAD, b_pad), jnp.float32),
        grid=grid,
        in_specs=[
            # parameter slab: constant block index -> DMA'd once, stays resident
            pl.BlockSpec((PARAM_ROWS, PARAM_COLS), lambda i: (0, 0)),
            # activations: batch tiled along the 128-lane axis
            pl.BlockSpec((IN_PAD, tile), lambda i: (0, i)),
        ],
        out_specs=pl.BlockSpec((OUT_PAD, tile), lambda i: (0, i)),
        compiler_params=pltpu.CompilerParams(
            dimension_semantics=("parallel",),       # v7x: shard batch over 2 TCs
            vmem_limit_bytes=32 * 1024 * 1024,       # safe on v5e/v6e/v7x
        ),
    )(packed_params, x_t)

    # Single slice+transpose pass back to the (batch, 5) interface layout.
    return out_t[:OUT_DIM, :batch].T


def init_params(key, input_dim=IN_DIM, hidden1=H1, hidden2=H2, output_dim=OUT_DIM):
    """Deterministic init mimicking torch.nn.Linear (uniform +/- 1/sqrt(fan_in)).

    Weights are stored in PyTorch layout (out_features, in_features)."""
    keys = jax.random.split(key, 6)

    def linear(kw, kb, fan_in, fan_out):
        bound = 1.0 / math.sqrt(fan_in)
        w = jax.random.uniform(kw, (fan_out, fan_in), jnp.float32, -bound, bound)
        b = jax.random.uniform(kb, (fan_out,), jnp.float32, -bound, bound)
        return w, b

    w1, b1 = linear(keys[0], keys[1], input_dim, hidden1)
    w2, b2 = linear(keys[2], keys[3], hidden1, hidden2)
    w3, b3 = linear(keys[4], keys[5], hidden2, output_dim)
    return (w1, b1, w2, b2, w3, b3)


def pack_params(params):
    """Pack all Linear weights/biases into one (56, 128) f32 slab (single DMA).

    W1 cols 12..15 and W3/b3 rows 5..7 stay zero so the kernel can use full
    16-row input and 8-row output tiles."""
    w1, b1, w2, b2, w3, b3 = params
    slab = jnp.zeros((PARAM_ROWS, PARAM_COLS), jnp.float32)
    slab = slab.at[_W1_R0:_W1_R0 + H1, 0:IN_DIM].set(w1)
    slab = slab.at[_W1_R0:_W1_R0 + H1, _B1_COL].set(b1)
    slab = slab.at[_W2_R0:_W2_R0 + H2, 0:H1].set(w2)
    slab = slab.at[_W2_R0:_W2_R0 + H2, _B2_COL].set(b2)
    slab = slab.at[_W3_R0:_W3_R0 + OUT_DIM, 0:H2].set(w3)
    slab = slab.at[_W3_R0:_W3_R0 + OUT_DIM, _B3_COL].set(b3)
    return slab


def reference_forward(x, params):
    w1, b1, w2, b2, w3, b3 = params
    h = jax.nn.gelu(x @ w1.T + b1, approximate=False)
    h = jax.nn.gelu(h @ w2.T + b2, approximate=False)
    return h @ w3.T + b3


# TODO(synk): lip_loss requires torch.autograd.grad jacobians + sklearn scaler
# state (training-time utility, not part of forward); not implemented as a kernel.

if __name__ == "__main__":
    key = jax.random.PRNGKey(0)
    k_params, k_x1, k_x2 = jax.random.split(key, 3)

    params = init_params(k_params)
    packed = pack_params(params)

    # Small-shape check (single grid step).
    x_small = jax.random.normal(k_x1, (8, IN_DIM), dtype=jnp.float32)
    out_small = jax.block_until_ready(lipschitz_nn_forward(x_small, packed))
    ref_small = reference_forward(x_small, params)
    assert out_small.shape == (8, OUT_DIM)
    assert jnp.allclose(out_small, ref_small, atol=1e-5, rtol=1e-5), "small mismatch"

    # Multi-tile check (exercises the >=2 grid steps / padded-batch path).
    x_big = jax.random.normal(k_x2, (300, IN_DIM), dtype=jnp.float32)
    out_big = jax.block_until_ready(lipschitz_nn_forward(x_big, packed))
    ref_big = reference_forward(x_big, params)
    assert out_big.shape == (300, OUT_DIM)
    assert jnp.allclose(out_big, ref_big, atol=1e-5, rtol=1e-5), "big mismatch"

    print("KERNEL_OK")
</pallas_src>

<mosaic_0001>
module attributes {stable_mosaic.version = 11 : i64} {
  func.func @mlp_kernel(%arg0: i32, %arg1: memref<56x128xf32, #tpu.memory_space<vmem>>, %arg2: memref<16x128xf32, #tpu.memory_space<vmem>>, %arg3: memref<8x128xf32, #tpu.memory_space<vmem>>) attributes {dimension_semantics = [#tpu.dimension_semantics<parallel>], iteration_bounds = array<i64: 1>, scalar_prefetch = 0 : i64, scratch_operands = 0 : i64, tpu.core_type = #tpu.core_type<tc>, window_params = [{pipeline_mode = #tpu.pipeline_mode<synchronous>, transform_indices = @transform_0, window_bounds = array<i64: 56, 128>}, {transform_indices = @transform_1, window_bounds = array<i64: 16, 128>}, {transform_indices = @transform_2, window_bounds = array<i64: 8, 128>}]} {
    %c0 = arith.constant 0 : index
    %c0_0 = arith.constant 0 : index
    %0 = vector.load %arg1[%c0, %c0_0] : memref<56x128xf32, #tpu.memory_space<vmem>>, vector<32x16xf32>
    %c0_1 = arith.constant 0 : index
    %c16 = arith.constant 16 : index
    %1 = vector.load %arg1[%c0_1, %c16] : memref<56x128xf32, #tpu.memory_space<vmem>>, vector<32x1xf32>
    %c32 = arith.constant 32 : index
    %c0_2 = arith.constant 0 : index
    %2 = vector.load %arg1[%c32, %c0_2] : memref<56x128xf32, #tpu.memory_space<vmem>>, vector<16x32xf32>
    %c32_3 = arith.constant 32 : index
    %c32_4 = arith.constant 32 : index
    %3 = vector.load %arg1[%c32_3, %c32_4] : memref<56x128xf32, #tpu.memory_space<vmem>>, vector<16x1xf32>
    %c48 = arith.constant 48 : index
    %c0_5 = arith.constant 0 : index
    %4 = vector.load %arg1[%c48, %c0_5] : memref<56x128xf32, #tpu.memory_space<vmem>>, vector<8x16xf32>
    %c48_6 = arith.constant 48 : index
    %c16_7 = arith.constant 16 : index
    %5 = vector.load %arg1[%c48_6, %c16_7] : memref<56x128xf32, #tpu.memory_space<vmem>>, vector<8x1xf32>
    %c0_8 = arith.constant 0 : index
    %c0_9 = arith.constant 0 : index
    %6 = vector.load %arg2[%c0_8, %c0_9] : memref<16x128xf32, #tpu.memory_space<vmem>>, vector<16x128xf32>
    %cst = arith.constant dense<0.000000e+00> : vector<32x128xf32>
    %7 = tpu.matmul %0, %6, %cst {dimension_numbers = #tpu.dot_dimension_numbers<[1], [0], [0], [1], [0, 0, 1, 1], [], []>} : vector<32x16xf32>, vector<16x128xf32>, vector<32x128xf32> -> vector<32x128xf32>
    %8 = vector.broadcast %1 : vector<32x1xf32> to vector<32x128xf32>
    %9 = arith.addf %7, %8 : vector<32x128xf32>
    %cst_10 = arith.constant 5.000000e-01 : f32
    %10 = vector.broadcast %cst_10 : f32 to vector<32x128xf32>
    %11 = arith.mulf %10, %9 : vector<32x128xf32>
    %cst_11 = arith.constant 0.707106769 : f32
    %12 = vector.broadcast %cst_11 : f32 to vector<32x128xf32>
    %13 = arith.mulf %9, %12 : vector<32x128xf32>
    %14 = math.erf %13 : vector<32x128xf32>
    %cst_12 = arith.constant 1.000000e+00 : f32
    %15 = vector.broadcast %cst_12 : f32 to vector<32x128xf32>
    %16 = arith.addf %15, %14 : vector<32x128xf32>
    %17 = arith.mulf %11, %16 : vector<32x128xf32>
    %cst_13 = arith.constant dense<0.000000e+00> : vector<16x128xf32>
    %18 = tpu.matmul %2, %17, %cst_13 {dimension_numbers = #tpu.dot_dimension_numbers<[1], [0], [0], [1], [0, 0, 1, 1], [], []>} : vector<16x32xf32>, vector<32x128xf32>, vector<16x128xf32> -> vector<16x128xf32>
    %19 = vector.broadcast %3 : vector<16x1xf32> to vector<16x128xf32>
    %20 = arith.addf %18, %19 : vector<16x128xf32>
    %cst_14 = arith.constant 5.000000e-01 : f32
    %21 = vector.broadcast %cst_14 : f32 to vector<16x128xf32>
    %22 = arith.mulf %21, %20 : vector<16x128xf32>
    %cst_15 = arith.constant 0.707106769 : f32
    %23 = vector.broadcast %cst_15 : f32 to vector<16x128xf32>
    %24 = arith.mulf %20, %23 : vector<16x128xf32>
    %25 = math.erf %24 : vector<16x128xf32>
    %cst_16 = arith.constant 1.000000e+00 : f32
    %26 = vector.broadcast %cst_16 : f32 to vector<16x128xf32>
    %27 = arith.addf %26, %25 : vector<16x128xf32>
    %28 = arith.mulf %22, %27 : vector<16x128xf32>
    %cst_17 = arith.constant dense<0.000000e+00> : vector<8x128xf32>
    %29 = tpu.matmul %4, %28, %cst_17 {dimension_numbers = #tpu.dot_dimension_numbers<[1], [0], [0], [1], [0, 0, 1, 1], [], []>} : vector<8x16xf32>, vector<16x128xf32>, vector<8x128xf32> -> vector<8x128xf32>
    %30 = vector.broadcast %5 : vector<8x1xf32> to vector<8x128xf32>
    %31 = arith.addf %29, %30 : vector<8x128xf32>
    %c0_18 = arith.constant 0 : index
    %c0_19 = arith.constant 0 : index
    %32 = vector.load %arg3[%c0_18, %c0_19] : memref<8x128xf32, #tpu.memory_space<vmem>>, vector<8x128xf32>
    tpu.vector_store %arg3[%c0_18, %c0_19], %31 {strides = array<i32>} : memref<8x128xf32, #tpu.memory_space<vmem>>, vector<8x128xf32>,
    return
  }
  func.func @transform_0(%arg0: i32) -> (i32, i32) {
    %c0_i32 = arith.constant 0 : i32
    %c0_i32_0 = arith.constant 0 : i32
    %c0_i32_1 = arith.constant 0 : i32
    return %c0_i32, %c0_i32_0 : i32, i32
  }
  func.func @transform_1(%arg0: i32) -> (i32, i32) {
    %c0_i32 = arith.constant 0 : i32
    %c0_i32_0 = arith.constant 0 : i32
    return %c0_i32, %arg0 : i32, i32
  }
  func.func @transform_2(%arg0: i32) -> (i32, i32) {
    %c0_i32 = arith.constant 0 : i32
    %c0_i32_0 = arith.constant 0 : i32
    return %c0_i32, %arg0 : i32, i32
  }
}

</mosaic_0001>

<bundles_post_ra>
// kernel: lipschitz_nn_forward.1
= control target key start
LH: loop header
LB: loop body
LE: loop exit
PB: predicated region body
PF: predicated region fallthrough
CT: control target
= control target key end

     0   :  { %vm40_vm0 = vcmask 130048   ;;  %v408_v3 = vmov 16   ;;  %vm164_vm1 = vcmask 261120   ;;  %v409_v9 = vmov 32   ;;  %s464_s1 = inlined_call_operand.vmem [shape: f32[16,128], index: 1, kind: input, shape index: {}]   ;;  %s465_s0 = inlined_call_operand.vmem [shape: f32[56,128], index: 0, kind: input, shape index: {}]   ;;  %s466_s2 = inlined_call_operand.vmem [shape: f32[8,128], index: 2, kind: output, shape index: {}]  }
   0x1   :  { %v19_v0 = vld [vmem:[%s464_s1 + $0x8] sm:$0xff]  ;;  %v18_v1 = vld [vmem:[%s464_s1] sm:$0xff]  ;;  %391 = vset.pattern.permute.xlu1 %v408_v3  ;;  %390 = vset.pattern.permute.xlu0 %v408_v3  ;;  %v14_v4 = vld [vmem:[%s465_s0 + $0x18] sm:$0xff]  ;;  %v410_v42 = vmov 0.0   ;;  %vm411_vm2 = vmmov 0  }
   0x2   :  { %v11_v2 = vld [vmem:[%s465_s0] sm:$0xff]  ;;  %358 = vmatprep.subr.mxu0 %v19_v0  ;;  %v12_v5 = vld [vmem:[%s465_s0 + $0x8] sm:$0xff]  ;;  %37 = vperm.xlu0 %390, %v14_v4   ;;  %v13_v6 = vld [vmem:[%s465_s0 + $0x10] sm:$0xff] }
   0x3   :  { %362 = vmatprep.mubr.msk.f32.mxu0 %vm40_vm0, %v11_v2  ;;  %359 = vmatpush3.msra.mxu0 %v19_v0  ;;  %v15_v7 = vld [vmem:[%s465_s0 + $0x20] sm:$0xff]  ;;  %v16_v8 = vld [vmem:[%s465_s0 + $0x28] sm:$0xff]  ;;  %v17_v43 = vld [vmem:[%s465_s0 + $0x30] sm:$0xff] }
   0x4   :  { %360 = vmatprep.subr.mxu0 %v18_v1  ;;  %27 = vperm.xlu1 %391, %v12_v5  }
   0x5   :  { %361 = vmatpush3.msra.mxu0 %v18_v1  ;;  %376 = vmatprep.mubr.msk.f32.mxu1 %vm164_vm1, %v15_v7 }
   0x6   :  { %363 = vmatmul.mubr.msk.f32.vlgmr.msra.gmra.mxu0 %vm40_vm0, %v12_v5  ;;  %32 = vperm.xlu0 %390, %v13_v6  }
   0x7   :  { %365 = vmatprep.mubr.msk.f32.mxu0 %vm40_vm0, %v13_v6  ;;  %379 = vmatprep.subr.mxu0 %v410_v42 }
   0x8   :  { %22 = vperm.xlu1 %391, %v11_v2  }
   0xa   :  { %366 = vmatmul.mubr.msk.f32.gmra.mxu0 %vm40_vm0, %v14_v4  ;;  %392 = vset.pattern.permute.xlu0 %v409_v9 }
   0xb   :  { %161 = vperm.xlu0 %392, %v16_v8   ;;  %383 = vmatprep.mubr.msk.f32.mxu0 %vm411_vm2, %v410_v42 }
   0xc   :  { %393 = vset.pattern.permute.xlu1 %v409_v9 }
   0xd   :  { %156 = vperm.xlu1 %393, %v15_v7  }
   0xf   :  { %395 = vset.pattern.permute.xlu0 %v408_v3 }
  0x11   :  { %394 = vset.pattern.permute.xlu1 %v408_v3 }
  0x12   :  { %256 = vperm.xlu1 %394, %v17_v43  }
  0x7d   :  { %v38_v11 = vpop.permute.xlu0 %37 }
  0x7f   :  { %v28_v10 = vpop.permute.xlu1 %27 }
  0x81   :  { %v33_v20 = vpop.permute.xlu0 %32 }
  0x83   :  { %v23_v13 = vpop.permute.xlu1 %22 }
  0x86   :  { %v162_v44 = vpop.permute.xlu0 %161 }
  0x88   :  { %v157_v46 = vpop.permute.xlu1 %156 }
  0x8d   :  { %v257_v60 = vpop.permute.xlu1 %256 }
  0xc6   :  { %v364_v12 = vpop.f32.mrf.mxu0 }
  0xc7   :  { %v121_v14 = vadd.f32 %v364_v12, %v28_v10 }
  0xc8   :  { %v115_v15 = vpop.f32.mrf.mxu0 }
  0xc9   :  { %v116_v16 = vadd.f32 %v115_v15, %v23_v13  ;;  %v139_v17 = vmul.f32 0.70710677, %v121_v14  ;;  %v135_v36 = vmul.f32 0.5, %v121_v14 }
  0xca   :  { %v367_v18 = vpop.f32.mrf.mxu0 }
  0xcb   :  { %v131_v19 = vadd.f32 %v367_v18, %v38_v11  ;;  %v138_v21 = vmul.f32 0.70710677, %v116_v16  ;;  %396 = verf.f32 %v139_v17  ;;  %v134_v39 = vmul.f32 0.5, %v116_v16 }
  0xcc   :  { %v125_v22 = vpop.f32.mrf.mxu0 }
  0xcd   :  { %v141_v23 = vmul.f32 0.70710677, %v131_v19  ;;  %v126_v24 = vadd.f32 %v125_v22, %v33_v20  ;;  %v137_v29 = vmul.f32 0.5, %v131_v19 }
  0xcf   :  { %398 = verf.f32 %v141_v23  ;;  %v140_v25 = vmul.f32 0.70710677, %v126_v24  ;;  %v136_v32 = vmul.f32 0.5, %v126_v24 }
  0xd0   :  { %400 = verf.f32 %v138_v21 }
  0xd1   :  { %402 = verf.f32 %v140_v25 }
  0xd8   :  { %v397_v26 = vpop.eup %396 }
  0xd9   :  { %v147_v35 = vadd.f32 1.0, %v397_v26 }
  0xdb   :  { %v151_v40 = vmul.f32 %v147_v35, %v135_v36 }
  0xdc   :  { %v399_v27 = vpop.eup %398 }
  0xdd   :  { %v401_v28 = vpop.eup %400  ;;  %v149_v30 = vadd.f32 1.0, %v399_v27 }
  0xde   :  { %v403_v31 = vpop.eup %402  ;;  %v146_v38 = vadd.f32 1.0, %v401_v28 }
  0xdf   :  { %v153_v33 = vmul.f32 %v149_v30, %v137_v29  ;;  %v148_v34 = vadd.f32 1.0, %v403_v31 }
  0xe0   :  { %v150_v41 = vmul.f32 %v146_v38, %v134_v39 }
  0xe1   :  { %368 = vmatprep.subr.mxu1 %v153_v33  ;;  %v152_v37 = vmul.f32 %v148_v34, %v136_v32 }
  0xe2   :  { %369 = vmatpush3.msra.mxu1 %v153_v33 }
  0xe3   :  { %370 = vmatprep.subr.mxu1 %v152_v37 }
  0xe4   :  { %371 = vmatpush3.msra.mxu1 %v152_v37 }
  0xe5   :  { %372 = vmatprep.subr.mxu1 %v151_v40 }
  0xe6   :  { %373 = vmatpush3.msra.mxu1 %v151_v40 }
  0xe7   :  { %374 = vmatprep.subr.mxu1 %v150_v41 }
  0xe8   :  { %375 = vmatpush3.msra.mxu1 %v150_v41 }
  0xe9   :  { %377 = vmatmul.mubr.msk.f32.vlgmr.msra.gmra.mxu1 %vm164_vm1, %v16_v8 }
 0x1a9   :  { %v378_v45 = vpop.f32.mrf.mxu1 }
 0x1aa   :  { %v241_v47 = vadd.f32 %v378_v45, %v162_v44 }
 0x1ab   :  { %v235_v48 = vpop.f32.mrf.mxu1 }
 0x1ac   :  { %v247_v49 = vmul.f32 0.70710677, %v241_v47  ;;  %v236_v50 = vadd.f32 %v235_v48, %v157_v46  ;;  %v245_v53 = vmul.f32 0.5, %v241_v47 }
 0x1ae   :  { %404 = verf.f32 %v247_v49  ;;  %v246_v51 = vmul.f32 0.70710677, %v236_v50  ;;  %v244_v57 = vmul.f32 0.5, %v236_v50 }
 0x1b0   :  { %406 = verf.f32 %v246_v51 }
 0x1bb   :  { %v405_v52 = vpop.eup %404 }
 0x1bc   :  { %v251_v54 = vadd.f32 1.0, %v405_v52 }
 0x1bd   :  { %v407_v55 = vpop.eup %406 }
 0x1be   :  { %v253_v56 = vmul.f32 %v251_v54, %v245_v53  ;;  %v250_v58 = vadd.f32 1.0, %v407_v55 }
 0x1c0   :  { %v252_v59 = vmul.f32 %v250_v58, %v244_v57  ;;  %380 = vmatpush3.msra.mxu0 %v253_v56 }
 0x1c1   :  { %381 = vmatprep.subr.mxu0 %v410_v42 }
 0x1c2   :  { %382 = vmatpush3.msra.mxu0 %v252_v59 }
 0x1c3   :  { %384 = vmatmul.mubr.msk.f32.vlgmr.msra.gmra.mxu0 %vm40_vm0, %v17_v43 }
 0x283   :  { %v327_v61 = vpop.f32.mrf.mxu0 }
 0x284   :  { %v328_v62 = vadd.f32 %v327_v61, %v257_v60 }
 0x285   :  { %v385_v63 = vpop.f32.mrf.mxu0 }
 0x286   :  { %331 = vst [vmem:[%s466_s2] sm:$0xff] %v328_v62 }

</bundles_post_ra>
